<compile_context>
chip_gen: v6e
topology: v6e:2x2x1
jax: 0.10.0
libtpu: 0.0.40
codegen_flags: <defaults>
</compile_context>

<pallas_src>
import functools

import jax
import jax.numpy as jnp
from jax.experimental import pallas as pl
from jax.experimental.pallas import tpu as pltpu


def _round_up(x, m):
    return ((x + m - 1) // m) * m


def _lm_kernel(x_ref, wcat_ref, bin_ref, wout_ref, bsum_ref, o_ref):
    """One batch tile: fused x@[w_in|w_x] -> tanh -> @w_out -> add -> softmax."""
    hp = bin_ref.shape[-1]                                         # padded hidden

    x = x_ref[...]                                                 # (TB, Dp) bf16

    # One wide matmul covering both projections that share LHS x.
    z = jnp.dot(x, wcat_ref[...], preferred_element_type=jnp.float32)  # (TB, 2Hp)
    z_in = z[:, :hp]                                               # inner branch
    z_x = z[:, hp:]                                                # skip branch

    inner = jnp.tanh(z_in + bin_ref[...])                          # f32 (TB, Hp)
    outer = jnp.dot(inner.astype(wout_ref.dtype), wout_ref[...],
                    preferred_element_type=jnp.float32)            # (TB, Hp)

    # bsum = b_out + b_x on real lanes, -1e9 on padded lanes (kills them in softmax).
    y = z_x + outer + bsum_ref[...]

    # Numerically stable softmax along the last dim.
    y = y - jnp.max(y, axis=-1, keepdims=True)
    e = jnp.exp(y)
    s = jnp.sum(e, axis=-1, keepdims=True)
    o_ref[...] = e * pl.reciprocal(s, approx=True)


@functools.partial(jax.jit, static_argnames=("tb",))
def language_model_forward(context, emb_table, w_in, b_in, w_out, b_out,
                           w_x, b_x, *, tb=8):
    """context: (B, L) int32.  Returns softmax'd (B, H) float32."""
    B, L = context.shape
    _, Dv = emb_table.shape
    D = L * Dv
    H = w_in.shape[1]

    # Embedding lookup + flatten (JAX glue).
    # TODO(synk): move the gather in-kernel via PrefetchScalarGridSpec row-gather
    # to avoid materializing x in HBM.
    x = jnp.take(emb_table, context, axis=0).reshape(B, D).astype(jnp.float32)

    # Lane/sublane-friendly padded sizes.
    Dp = _round_up(D, 128)
    Hp = _round_up(H, 128)
    TB = max(8, _round_up(min(tb, B), 8))
    Bp = _round_up(B, TB)

    neg = jnp.float32(-1e9)

    # Zero-padded, bf16 matmul operands (f32 accumulation requested in-kernel).
    x_p = jnp.zeros((Bp, Dp), jnp.float32).at[:B, :D].set(x).astype(jnp.bfloat16)
    w_in_p = jnp.zeros((Dp, Hp), jnp.float32).at[:D, :H].set(w_in)
    w_x_p = jnp.zeros((Dp, Hp), jnp.float32).at[:D, :H].set(w_x)
    w_cat = jnp.concatenate([w_in_p, w_x_p], axis=1).astype(jnp.bfloat16)   # (Dp, 2Hp)
    w_out_p = (jnp.zeros((Hp, Hp), jnp.float32).at[:H, :H].set(w_out)
               .astype(jnp.bfloat16))

    b_in_p = jnp.zeros((1, Hp), jnp.float32).at[:, :H].set(b_in)
    # Fused post-bias; padded lanes get -1e9 so softmax ignores them.
    b_sum_p = jnp.full((1, Hp), neg, jnp.float32).at[:, :H].set(b_out + b_x)

    grid = (Bp // TB,)

    flops = 2 * Bp * Dp * (2 * Hp) + 2 * Bp * Hp * Hp
    transcendentals = 2 * Bp * Hp  # tanh + exp
    bytes_accessed = (x_p.size * 2 + w_cat.size * 2 + w_out_p.size * 2
                      + b_in_p.size * 4 + b_sum_p.size * 4 + Bp * Hp * 4)

    out_p = pl.pallas_call(
        _lm_kernel,
        out_shape=jax.ShapeDtypeStruct((Bp, Hp), jnp.float32),
        grid_spec=pltpu.PrefetchScalarGridSpec(
            num_scalar_prefetch=0,
            grid=grid,
            in_specs=[
                pl.BlockSpec((TB, Dp), lambda i: (i, 0)),        # x batch tile
                pl.BlockSpec((Dp, 2 * Hp), lambda i: (0, 0)),    # fused weight (resident)
                pl.BlockSpec((1, Hp), lambda i: (0, 0)),         # b_in
                pl.BlockSpec((Hp, Hp), lambda i: (0, 0)),        # w_out (resident)
                pl.BlockSpec((1, Hp), lambda i: (0, 0)),         # b_out + b_x (pad -1e9)
            ],
            out_specs=pl.BlockSpec((TB, Hp), lambda i: (i, 0)),
        ),
        compiler_params=pltpu.CompilerParams(
            dimension_semantics=("parallel",),
            vmem_limit_bytes=32 * 1024 * 1024,
        ),
        cost_estimate=pl.CostEstimate(
            flops=flops,
            transcendentals=transcendentals,
            bytes_accessed=bytes_accessed,
        ),
    )(x_p, w_cat, b_in_p, w_out_p, b_sum_p)

    # Strip batch / hidden padding.
    return out_p[:B, :H]


def _reference(context, emb_table, w_in, b_in, w_out, b_out, w_x, b_x):
    B, _ = context.shape
    x = jnp.take(emb_table, context, axis=0).reshape(B, -1)
    inner = jnp.tanh(x @ w_in + b_in)
    outer = inner @ w_out + b_out
    x_proj = x @ w_x + b_x
    y = x_proj + outer
    return jax.nn.softmax(y, axis=-1)


if __name__ == "__main__":
    # Small, deterministic configuration.
    vocab_size = 30
    vector_dim = 8
    max_len = 4
    hidden_size = 32
    batch = 16
    D = vector_dim * max_len

    key = jax.random.PRNGKey(0)
    k_ctx, k_emb, k_wi, k_bi, k_wo, k_bo, k_wx, k_bx = jax.random.split(key, 8)

    context = jax.random.randint(k_ctx, (batch, max_len), 0, vocab_size,
                                 dtype=jnp.int32)
    emb_table = jax.random.normal(k_emb, (vocab_size, vector_dim),
                                  dtype=jnp.float32) * 0.1
    # Linear params stored as (in, out): y = x @ W + b (== torch x @ W.T + b).
    w_in = jax.random.normal(k_wi, (D, hidden_size), jnp.float32) * (1.0 / D ** 0.5)
    b_in = jax.random.normal(k_bi, (1, hidden_size), jnp.float32) * 0.01
    w_out = jax.random.normal(k_wo, (hidden_size, hidden_size), jnp.float32) * (
        1.0 / hidden_size ** 0.5)
    b_out = jax.random.normal(k_bo, (1, hidden_size), jnp.float32) * 0.01
    w_x = jax.random.normal(k_wx, (D, hidden_size), jnp.float32) * (1.0 / D ** 0.5)
    b_x = jax.random.normal(k_bx, (1, hidden_size), jnp.float32) * 0.01

    y_pred = language_model_forward(context, emb_table, w_in, b_in,
                                    w_out, b_out, w_x, b_x, tb=8)
    y_pred = jax.block_until_ready(y_pred)

    y_ref = _reference(context, emb_table, w_in, b_in, w_out, b_out, w_x, b_x)
    assert y_pred.shape == (batch, hidden_size)
    # bf16 matmuls + approx reciprocal -> compare against f32 ref with loose tol.
    assert jnp.allclose(y_pred, y_ref, atol=5e-3, rtol=5e-2), (
        "mismatch vs reference: max abs diff = "
        f"{float(jnp.max(jnp.abs(y_pred - y_ref)))}")
    assert jnp.allclose(jnp.sum(y_pred, axis=-1), 1.0, atol=5e-3)

    print("KERNEL_OK")
</pallas_src>

<mosaic_0001>
module attributes {stable_mosaic.version = 11 : i64} {
  func.func @_lm_kernel(%arg0: i32, %arg1: memref<8x128xbf16, #tpu.memory_space<vmem>>, %arg2: memref<128x256xbf16, #tpu.memory_space<vmem>>, %arg3: memref<1x128xf32, #tpu.memory_space<vmem>>, %arg4: memref<128x128xbf16, #tpu.memory_space<vmem>>, %arg5: memref<1x128xf32, #tpu.memory_space<vmem>>, %arg6: memref<8x128xf32, #tpu.memory_space<vmem>>) attributes {dimension_semantics = [#tpu.dimension_semantics<parallel>], iteration_bounds = array<i64: 2>, scalar_prefetch = 0 : i64, scratch_operands = 0 : i64, tpu.core_type = #tpu.core_type<tc>, window_params = [{transform_indices = @transform_0, window_bounds = array<i64: 8, 128>}, {pipeline_mode = #tpu.pipeline_mode<synchronous>, transform_indices = @transform_1, window_bounds = array<i64: 128, 256>}, {pipeline_mode = #tpu.pipeline_mode<synchronous>, transform_indices = @transform_2, window_bounds = array<i64: 1, 128>}, {pipeline_mode = #tpu.pipeline_mode<synchronous>, transform_indices = @transform_3, window_bounds = array<i64: 128, 128>}, {pipeline_mode = #tpu.pipeline_mode<synchronous>, transform_indices = @transform_4, window_bounds = array<i64: 1, 128>}, {transform_indices = @transform_5, window_bounds = array<i64: 8, 128>}]} {
    %c0 = arith.constant 0 : index
    %c0_0 = arith.constant 0 : index
    %0 = vector.load %arg1[%c0, %c0_0] : memref<8x128xbf16, #tpu.memory_space<vmem>>, vector<8x128xbf16>
    %c0_1 = arith.constant 0 : index
    %c0_2 = arith.constant 0 : index
    %1 = vector.load %arg2[%c0_1, %c0_2] : memref<128x256xbf16, #tpu.memory_space<vmem>>, vector<128x256xbf16>
    %cst = arith.constant dense<0.000000e+00> : vector<8x256xf32>
    %2 = tpu.matmul %0, %1, %cst {dimension_numbers = #tpu.dot_dimension_numbers<[1], [0], [0], [1], [0, 0, 1, 1], [], []>} : vector<8x128xbf16>, vector<128x256xbf16>, vector<8x256xf32> -> vector<8x256xf32>
    %3 = vector.extract_strided_slice %2 {offsets = [0, 0], sizes = [8, 128], strides = [1, 1]} : vector<8x256xf32> to vector<8x128xf32>
    %4 = vector.extract_strided_slice %2 {offsets = [0, 128], sizes = [8, 128], strides = [1, 1]} : vector<8x256xf32> to vector<8x128xf32>
    %c0_3 = arith.constant 0 : index
    %c0_4 = arith.constant 0 : index
    %5 = vector.load %arg3[%c0_3, %c0_4] : memref<1x128xf32, #tpu.memory_space<vmem>>, vector<1x128xf32>
    %6 = vector.broadcast %5 : vector<1x128xf32> to vector<8x128xf32>
    %7 = arith.addf %3, %6 : vector<8x128xf32>
    %8 = math.tanh %7 : vector<8x128xf32>
    %9 = arith.truncf %8 : vector<8x128xf32> to vector<8x128xbf16>
    %c0_5 = arith.constant 0 : index
    %c0_6 = arith.constant 0 : index
    %10 = vector.load %arg4[%c0_5, %c0_6] : memref<128x128xbf16, #tpu.memory_space<vmem>>, vector<128x128xbf16>
    %cst_7 = arith.constant dense<0.000000e+00> : vector<8x128xf32>
    %11 = tpu.matmul %9, %10, %cst_7 {dimension_numbers = #tpu.dot_dimension_numbers<[1], [0], [0], [1], [0, 0, 1, 1], [], []>} : vector<8x128xbf16>, vector<128x128xbf16>, vector<8x128xf32> -> vector<8x128xf32>
    %12 = arith.addf %4, %11 : vector<8x128xf32>
    %c0_8 = arith.constant 0 : index
    %c0_9 = arith.constant 0 : index
    %13 = vector.load %arg5[%c0_8, %c0_9] : memref<1x128xf32, #tpu.memory_space<vmem>>, vector<1x128xf32>
    %14 = vector.broadcast %13 : vector<1x128xf32> to vector<8x128xf32>
    %15 = arith.addf %12, %14 : vector<8x128xf32>
    %cst_10 = arith.constant dense<0xFF800000> : vector<8xf32>
    %16 = vector.multi_reduction <maximumf>, %15, %cst_10 [1] : vector<8x128xf32> to vector<8xf32>
    %17 = vector.shape_cast %16 : vector<8xf32> to vector<8x1xf32>
    %18 = vector.broadcast %17 : vector<8x1xf32> to vector<8x128xf32>
    %19 = arith.subf %15, %18 : vector<8x128xf32>
    %20 = math.exp %19 : vector<8x128xf32>
    %cst_11 = arith.constant dense<0.000000e+00> : vector<8xf32>
    %21 = vector.multi_reduction <add>, %20, %cst_11 [1] : vector<8x128xf32> to vector<8xf32>
    %22 = vector.shape_cast %21 : vector<8xf32> to vector<8x1xf32>
    %23 = tpu.reciprocal %22 {approx = true} : vector<8x1xf32> -> vector<8x1xf32>
    %24 = vector.broadcast %23 : vector<8x1xf32> to vector<8x128xf32>
    %25 = arith.mulf %20, %24 : vector<8x128xf32>
    %c0_12 = arith.constant 0 : index
    %c0_13 = arith.constant 0 : index
    %26 = vector.load %arg6[%c0_12, %c0_13] : memref<8x128xf32, #tpu.memory_space<vmem>>, vector<8x128xf32>
    tpu.vector_store %arg6[%c0_12, %c0_13], %25 {strides = array<i32>} : memref<8x128xf32, #tpu.memory_space<vmem>>, vector<8x128xf32>,
    return
  }
  func.func @transform_0(%arg0: i32) -> (i32, i32) {
    %c0_i32 = arith.constant 0 : i32
    %c0_i32_0 = arith.constant 0 : i32
    return %arg0, %c0_i32 : i32, i32
  }
  func.func @transform_1(%arg0: i32) -> (i32, i32) {
    %c0_i32 = arith.constant 0 : i32
    %c0_i32_0 = arith.constant 0 : i32
    %c0_i32_1 = arith.constant 0 : i32
    return %c0_i32, %c0_i32_0 : i32, i32
  }
  func.func @transform_2(%arg0: i32) -> (i32, i32) {
    %c0_i32 = arith.constant 0 : i32
    %c0_i32_0 = arith.constant 0 : i32
    %c0_i32_1 = arith.constant 0 : i32
    return %c0_i32, %c0_i32_0 : i32, i32
  }
  func.func @transform_3(%arg0: i32) -> (i32, i32) {
    %c0_i32 = arith.constant 0 : i32
    %c0_i32_0 = arith.constant 0 : i32
    %c0_i32_1 = arith.constant 0 : i32
    return %c0_i32, %c0_i32_0 : i32, i32
  }
  func.func @transform_4(%arg0: i32) -> (i32, i32) {
    %c0_i32 = arith.constant 0 : i32
    %c0_i32_0 = arith.constant 0 : i32
    %c0_i32_1 = arith.constant 0 : i32
    return %c0_i32, %c0_i32_0 : i32, i32
  }
  func.func @transform_5(%arg0: i32) -> (i32, i32) {
    %c0_i32 = arith.constant 0 : i32
    %c0_i32_0 = arith.constant 0 : i32
    return %arg0, %c0_i32 : i32, i32
  }
}

</mosaic_0001>

<bundles_post_ra>
// kernel: language_model_forward.1
= control target key start
LH: loop header
LB: loop body
LE: loop exit
PB: predicated region body
PF: predicated region fallthrough
CT: control target
= control target key end

     0   :  { %10 = vsyncpa [#allocation3], 0  ;;  %s971_s0 = inlined_call_operand.vmem [shape: bf16[16,128], index: 0, kind: input, shape index: {}]   ;;  %s972_s1 = inlined_call_operand.vmem [shape: bf16[128,256], index: 1, kind: input, shape index: {}]   ;;  %s973_s2 = inlined_call_operand.vmem [shape: f32[1,128], index: 2, kind: input, shape index: {}]   ;;  %s974_s3 = inlined_call_operand.vmem [shape: bf16[128,128], index: 3, kind: input, shape index: {}]   ;;  %s975_s4 = inlined_call_operand.vmem [shape: f32[1,128], index: 4, kind: input, shape index: {}]   ;;  %s976_s5 = inlined_call_operand.hbm [shape: f32[16,128], index: 5, kind: output, shape index: {}]  }
   0x1   :  { %12 = vsyncpa [#allocation3 + $0x1], 0  ;;  %s806_s18 = smov 0   ;;  %s808_s19 = smov 0  }
   0x2   :  { %s810_s20 = smov 0   ;;  %s812_s21 = smov 0  }
   0x3 LB: > { %s827_s22 = sadd.s32 4294967295, %s770_s21   ;;  %s565_s23 = sadd.s32 4294967294, %s770_s21   ;;  %s770_s21 = sphi %s812_s21, %s982_s21   ;;  %s766_s20 = sphi %s810_s20, %s981_s20   ;;  %s762_s19 = sphi %s808_s19, %s980_s19   ;;  %s758_s18 = sphi %s806_s18, %s979_s18  }
   0x4   : > { %s831_s24 = sadd.s32 1, %s770_s21   ;;  %s135_s25 = sadd.s32 1, %s766_s20 }
   0x5   : > { %s132_s26 = ssub.s32 %s770_s21, %s831_s24  ;;  %p145_p0 = scmp.ne.s32.totalorder %s766_s20, %s762_s19 }
   0x6   : > { %p133_p1 = scmp.eq.s32.totalorder %s132_s26, 0  ;;  %p146_p2 = scmp.eq.s32.totalorder %s827_s22, 1 }
   0x7   : > { %p151_p3 = scmp.ne.s32.totalorder %s762_s19, %s758_s18  ;;  %p152_p4 = scmp.eq.s32.totalorder %s565_s23, 1 }
   0x8   : > { %s842_s27 = scalar_select %p133_p1, %s766_s20, %s135_s25  }
   0x9   : > { %p844_p5 = por %p146_p2, %p145_p0  ;;  %p848_p6 = por %p152_p4, %p151_p3 }
   0xa   : > { %p568_p7 = scmp.ge.s32.totalorder %s770_s21, 1  ;;  %p189_p8 = scmp.lt.s32.totalorder %s770_s21, 3 }
   0xc   : > { %p190_p9 = pnand %p568_p7, %p189_p8 }
   0xd   : > { %p216_p10 = scmp.lt.s32.totalorder (!%p190_p9), %s827_s22, 1  ;;  %s213_s14 = sand.u32 (!%p190_p9), 1, %s762_s19  }
   0xe   : > { %193 = sbr.rel (%p190_p9) target bundleno = 783 (0x30f), region = 40  ;;  %s598_s16 = sshll.u32 (!%p190_p9), %s827_s22, 7 }
   0xf   : > { %s493_s6 = scalar_lea.sflag (!%p190_p9), [#allocation3], %s213_s14  ;;  %s775_s8 = smov (!%p190_p9), [#allocation2]  }
  0x10   : > { %s714_s9 = sshll.u32 (!%p190_p9), %s775_s8, 4  ;;  %s715_s9 = int_to_ptr.vmem [resolvable:$false] %s714_s9 }
  0x13   : > { %v672_v0 = vld [vmem:[%s972_s1 + $0x74] ss:$8 sps:$4 sm:$0xff]   ;;  %v674_v1 = vld [vmem:[%s972_s1 + $0x70] ss:$8 sps:$4 sm:$0xff]   ;;  %v772_v2 = vmov 0   ;;  %v773_v4 = vmov 0.0  }
  0x14   : > { %350 = vmatprep.mubr.bf16.mxu0 %v772_v2  ;;  %318 = vmatprep.subr.bf16.mxu0 %v672_v0  ;;  %v675_v3 = vld [vmem:[%s972_s1 + $0x64] ss:$8 sps:$4 sm:$0xff]   ;;  %v677_v5 = vld [vmem:[%s972_s1 + $0x60] ss:$8 sps:$4 sm:$0xff]   ;;  %v678_v6 = vld [vmem:[%s972_s1 + $0x54] ss:$8 sps:$4 sm:$0xff]  }
  0x15   : > { %610 = vmatprep.subr.bf16.mxu1 %v773_v4  ;;  %319 = vmatpush1.bf16.msra.mxu0 %v674_v1  ;;  %v680_v7 = vld [vmem:[%s972_s1 + $0x50] ss:$8 sps:$4 sm:$0xff]   ;;  %v681_v8 = vld [vmem:[%s972_s1 + $0x44] ss:$8 sps:$4 sm:$0xff]   ;;  %v683_v9 = vld [vmem:[%s972_s1 + $0x40] ss:$8 sps:$4 sm:$0xff]  }
  0x16   : > { %320 = vmatprep.subr.bf16.mxu0 %v675_v3  ;;  %v696_v10 = vld [vmem:[%s974_s3 + $0x38] sm:$0xff]   ;;  %v697_v13 = vld [vmem:[%s974_s3 + $0x30] sm:$0xff]   ;;  %v687_v14 = vld [vmem:[%s972_s1 + $0x24] ss:$8 sps:$4 sm:$0xff]   ;;  %s217_s30 = scalar_select %p216_p10, %s827_s22, 1  ;;  %vm774_vm0 = vmmov 0  }
  0x17   : > { %v684_v11 = vld [vmem:[%s972_s1 + $0x34] ss:$8 sps:$4 sm:$0xff]   ;;  %v686_v12 = vld [vmem:[%s972_s1 + $0x30] ss:$8 sps:$4 sm:$0xff]   ;;  %611 = vmatpush3.bf16.msra.mxu1 %v696_v10  ;;  %v698_v15 = vld [vmem:[%s974_s3 + $0x28] sm:$0xff]   ;;  %626 = vmatprep.mubr.msk.bf16.mxu1 %vm774_vm0, %v773_v4  ;;  %s716_s22 = scalar_lea.vmem %s715_s9, 256 }
  0x18   : > { %612 = vmatprep.subr.bf16.mxu1 %v773_v4  ;;  %v689_v16 = vld [vmem:[%s972_s1 + $0x20] ss:$8 sps:$4 sm:$0xff]   ;;  %v690_v17 = vld [vmem:[%s972_s1 + $0x14] ss:$8 sps:$4 sm:$0xff]   ;;  %v692_v18 = vld [vmem:[%s972_s1 + $0x10] ss:$8 sps:$4 sm:$0xff]  }
  0x19   : > { %321 = vmatpush1.bf16.msra.mxu0 %v677_v5  ;;  %v693_v19 = vld [vmem:[%s972_s1 + $0x4] ss:$8 sps:$4 sm:$0xff]   ;;  %s570_s10 = sshll.u32 %s217_s30, 2  ;;  %v695_v20 = vld [vmem:[%s972_s1] ss:$8 sps:$4 sm:$0xff]   ;;  %v700_v23 = vld [vmem:[%s974_s3 + $0x18] sm:$0xff]   ;;  %s504_s30 = scalar_lea.hbm %s976_s5, %s598_s16 }
  0x1a   : > { %322 = vmatprep.subr.bf16.mxu0 %v678_v6  ;;  %s219_s15 = scalar_lea.vmem %s971_s0, %s570_s10  ;;  %v699_v22 = vld [vmem:[%s974_s3 + $0x20] sm:$0xff]   ;;  %v701_v24 = vld [vmem:[%s974_s3 + $0x10] sm:$0xff]   ;;  %v702_v25 = vld [vmem:[%s974_s3 + $0x8] sm:$0xff]  }
  0x1b   : > { %613 = vmatpush3.bf16.msra.mxu1 %v697_v13  ;;  %v221_v21 = vld [vmem:[%s219_s15] sm:$0xf]  ;;  %s569_s15 = sshll.u32 %s213_s14, 3 }
  0x1c   : > { %614 = vmatprep.subr.bf16.mxu1 %v773_v4  ;;  %v703_v26 = vld [vmem:[%s974_s3] sm:$0xff]   ;;  %s215_s17 = scalar_lea.vmem [#allocation2], %s569_s15 }
  0x1d   : > { %323 = vmatpush1.bf16.msra.mxu0 %v680_v7  ;;  %v587_v27 = vld [vmem:[%s973_s2] ss:$0 sm:$0xff]  ;;  %s506_s23 = sshll.u32 %s215_s17, 4  ;;  %s507_s23 = int_to_ptr.vmem [resolvable:$true] %s506_s23 }
  0x1e   : > { %324 = vmatprep.subr.bf16.mxu0 %v681_v8  ;;  %v596_v36 = vld [vmem:[%s975_s4] ss:$0 sm:$0xff]  ;;  %s710_s7 = scalar_lea.vmem %s507_s23, 128  ;;  %p717_p0 = scmp.lt.s32.totalorder %s507_s23, %s715_s9 }
  0x1f   : > { %615 = vmatpush3.bf16.msra.mxu1 %v698_v15  ;;  %p711_p11 = scmp.ne.s32.totalorder %s507_s23, %s710_s7  ;;  %p718_p1 = scmp.lt.s32.totalorder %s716_s22, %s710_s7 }
  0x20   : > { %616 = vmatprep.subr.bf16.mxu1 %v773_v4 }
  0x21   : > { %325 = vmatpush1.bf16.msra.mxu0 %v683_v9  ;;  %p712_p12 = pnand %p711_p11, %p844_p5  ;;  %p719_p2 = por %p718_p1, %p717_p0 }
  0x22   : > { %326 = vmatprep.subr.bf16.mxu0 %v684_v11 }
  0x23   : > { %617 = vmatpush3.bf16.msra.mxu1 %v699_v22  ;;  %p713_p13 = pneg %p712_p12 }
  0x24   : > { %618 = vmatprep.subr.bf16.mxu1 %v773_v4 }
  0x25   : > { %327 = vmatpush1.bf16.msra.mxu0 %v686_v12  ;;  %p720_p3 = pnand %p719_p2, %p713_p13 }
  0x26   : > { %328 = vmatprep.subr.bf16.mxu0 %v687_v14 }
  0x27   : > { %619 = vmatpush3.bf16.msra.mxu1 %v700_v23 }
  0x28   : > { %620 = vmatprep.subr.bf16.mxu1 %v773_v4 }
  0x29   : > { %329 = vmatpush1.bf16.msra.mxu0 %v689_v16 }
  0x2a   : > { %330 = vmatprep.subr.bf16.mxu0 %v690_v17 }
  0x2b   : > { %621 = vmatpush3.bf16.msra.mxu1 %v701_v24 }
  0x2c   : > { %622 = vmatprep.subr.bf16.mxu1 %v773_v4 }
  0x2d   : > { %331 = vmatpush1.bf16.msra.mxu0 %v692_v18 }
  0x2e   : > { %332 = vmatprep.subr.bf16.mxu0 %v693_v19 }
  0x2f   : > { %623 = vmatpush3.bf16.msra.mxu1 %v702_v25 }
  0x30   : > { %624 = vmatprep.subr.bf16.mxu1 %v773_v4 }
  0x31   : > { %333 = vmatpush1.bf16.msra.mxu0 %v695_v20 }
  0x33   : > { %625 = vmatpush3.bf16.msra.mxu1 %v703_v26 }
  0x34   : > { %351 = vmatmul.mubr.bf16.vlgmr.msra.gmra.mxu0 %v221_v21 }
  0xf4   : > { %v352_v28 = vpop.f32.mrf.mxu0 }
  0xf5   : > { %v366_v29 = vadd.f32 %v587_v27, %v352_v28 }
  0xf6   : > { %v354_v30 = vpop.f32.mrf.mxu0 }
  0xf7   : > { %704 = vtanh.f32 %v366_v29 }
  0xf8   : > { %v356_v31 = vpop.f32.mrf.mxu0 }
  0xfa   : > { %v357_v32 = vpop.f32.mrf.mxu0 }
 0x104   : > { %v705_v33 = vpop.eup %704 }
 0x105   : > { %v368_v34 = vpack.c.bf16 %v705_v33, %v705_v33 }
 0x107   : > { %627 = vmatmul.mubr.bf16.vlgmr.msra.gmra.mxu1 %v368_v34 }
 0x1c7   : > { %v467_v35 = vpop.f32.mrf.mxu1 }
 0x1c8   : > { %v473_v37 = vadd.f32 %v467_v35, %v354_v30 }
 0x1c9   : > { %v628_v38 = vpop.f32.mrf.mxu1 }
 0x1ca   : > { %v481_v39 = vadd.f32 %v596_v36, %v473_v37 }
 0x1cb   : > { %v470_v40 = vpop.f32.mrf.mxu1 }
 0x1cc   : > { %482 = vmax.xlane.f32.xlu0 %v481_v39 }
 0x1cd   : > { %v629_v41 = vpop.f32.mrf.mxu1 }
 0x255   : > { %v483_v42 = vpop.xlane.xlu0 %482 }
 0x256   : > { %v484_v43 = vsub.f32 %v481_v39, %v483_v42 }
 0x258   : > { %v485_v44 = vmul.f32 1.442695, %v484_v43 }
 0x25a   : > { %706 = vpow2.f32 %v485_v44 }
 0x267   : > { %v707_v45 = vpop.eup %706 }
 0x268   : > { %487 = vadd.xlane.f32.xlu0 %v707_v45 }
 0x2f1   : > { %v488_v46 = vpop.xlane.xlu0 %487 }
 0x2f2   : > { %708 = vrcp.f32 %v488_v46 }
 0x2ff   : > { %v709_v47 = vpop.eup %708 }
 0x300   : > { %v490_v48 = vmul.f32 %v709_v47, %v707_v45 }
 0x302   : > { %491 = vst [vmem:[%s215_s17] sm:$0xff] %v490_v48 }
 0x303   : > { %723 = shalt.err (!%p720_p3)
}
 0x304   : > { %s724_s10 = scalar_lea.hbm %s504_s30, 128  ;;  %s728_s13 = scalar_lea.hbm %s976_s5, 256 }
 0x305   : > { %p725_p4 = scmp.ne.s32.totalorder %s504_s30, %s724_s10  ;;  %p729_p9 = scmp.lt.s32.totalorder %s504_s30, %s976_s5 }
 0x306   : > { %p730_p10 = scmp.lt.s32.totalorder %s728_s13, %s724_s10 }
 0x307   : > { %p726_p7 = pnand %p725_p4, %p844_p5 }
 0x308   : > { %p731_p11 = por %p730_p10, %p729_p9 }
 0x309   : > { %p727_p8 = pneg %p726_p7 }
 0x30b   : > { %p732_p12 = pnand %p731_p11, %p727_p8 }
 0x30d   : > { %735 = shalt.err (!%p732_p12)
}
 0x30e   : > { %630 = dma.vmem_to_hbm [thread:$0]  (%p844_p5), %s507_s23, 128, %s504_s30, %s493_s6  }
 0x30f PF: > { %p636_p13 = scmp.ge.s32.totalorder %s770_s21, 2  ;;  %s518_s16 = sand.u32 1, %s758_s18  }
 0x310   : > { %s519_s17 = scalar_lea.sflag [#allocation3], %s518_s16 }
 0x311   : > { %p633_p0 = pnand %p636_p13, %p848_p6 }
 0x313   : > { %p634_p1 = pneg %p633_p0 }
 0x315   : > { %753 = dma.done.wait (%p634_p1), %s519_s17, 128  }
 0x316   : > { %755 = vsyncadd (%p634_p1), %s519_s17, 4294967168  ;;  %p15_p2 = scmp.ge.s32.totalorder %s831_s24, 4   ;;  %s979_s18 = smov %s762_s19 }
 0x317   : > { %s980_s19 = smov %s766_s20  ;;  %s981_s20 = smov %s842_s27 }
 0x318   : > { %s982_s21 = smov %s831_s24  ;;  %17 = sbr.rel (!%p15_p2) target bundleno = 3 (0x3), region = 75 }
 0x31d   :  { %524 = vsyncpa [#allocation3], 1 }
 0x31e   :  { %526 = vsyncpa [#allocation3 + $0x1], 1 }

</bundles_post_ra>
